<compile_context>
chip_gen: v7x
topology: tpu7x:2x2x1
jax: 0.10.0
libtpu: 0.0.40
codegen_flags: <defaults>
</compile_context>

<pallas_src>
import math

import jax
import jax.numpy as jnp
from jax.experimental import pallas as pl
from jax.experimental.pallas import tpu as pltpu


# Per-buffer tile byte budget.  x2 (input + output) x2 (double buffering) keeps
# steady-state VMEM <= ~8 MiB: safe under v5e's 16 MiB scoped default and
# leaves headroom on v7x (64 MiB physical / 32 MiB scoped default).
_TILE_BUDGET_BYTES = 2 * 1024 * 1024


# ---------------------------------------------------------------------------
# Kernels
# ---------------------------------------------------------------------------
def _last2_transpose_kernel(x_ref, o_ref):
    """x_ref: (TA, TB) tile; o_ref: (TB, TA) tile.  2-D transpose (XLU)."""
    o_ref[...] = x_ref[...].T


def _copy_kernel(x_ref, o_ref):
    """Pure (TA, TR) copy; the axis swap lives entirely in the index maps."""
    o_ref[...] = x_ref[...]


# ---------------------------------------------------------------------------
# Tile selection
# ---------------------------------------------------------------------------
def _fit_tile(extent, gran, cap_elems):
    """Largest legal tile along one dim: the full extent, or a multiple of
    `gran` that is <= max(cap_elems, gran)."""
    cap = max(int(cap_elems), gran)
    if extent <= cap:
        return extent
    return (cap // gran) * gran


def _pick_tiles(dim_a, dim_b, gran_a, gran_b, itemsize, budget):
    """Budget-driven (TA, TB): keep the smaller transposed dim whole (e.g. the
    HiFi-GAN channel dim) and grow the other in `gran` steps up to ~budget
    bytes per tile; if both dims are large, use a square-ish tile."""
    max_elems = max(budget // max(itemsize, 1), gran_a * gran_b)
    if dim_a * dim_b <= max_elems:
        return dim_a, dim_b                       # whole plane in one step
    if dim_a <= dim_b:
        ta = _fit_tile(dim_a, gran_a, math.isqrt(max_elems))
        tb = _fit_tile(dim_b, gran_b, max_elems // ta)
    else:
        tb = _fit_tile(dim_b, gran_b, math.isqrt(max_elems))
        ta = _fit_tile(dim_a, gran_a, max_elems // tb)
    return ta, tb


def _mem_cost(x):
    return pl.CostEstimate(flops=0, transcendentals=0,
                           bytes_accessed=int(2 * x.size * x.dtype.itemsize))


# ---------------------------------------------------------------------------
# Wrappers
# ---------------------------------------------------------------------------
def _transpose_last2(x3, *, budget=_TILE_BUDGET_BYTES):
    """(P, A, B) -> (P, B, A), tiled 2-D transpose over lane-dense blocks."""
    P, A, B = x3.shape
    itemsize = x3.dtype.itemsize
    # Each tile dim appears as the lane dim of one side and the sublane dim of
    # the other -> must be the full extent or a multiple of 128.
    TA, TB = _pick_tiles(A, B, 128, 128, itemsize, budget)
    # Keep >= 2 grid steps when possible so megacore (v7x) / the DMA pipeline
    # have something to overlap even for a single full-plane batch.
    if P * pl.cdiv(A, TA) * pl.cdiv(B, TB) < 2:
        if TB >= 256:
            TB = (TB // 2 // 128) * 128
        elif TA >= 256:
            TA = (TA // 2 // 128) * 128
    grid = (P, pl.cdiv(A, TA), pl.cdiv(B, TB))
    return pl.pallas_call(
        _last2_transpose_kernel,
        out_shape=jax.ShapeDtypeStruct((P, B, A), x3.dtype),
        grid=grid,
        in_specs=[pl.BlockSpec((None, TA, TB), lambda p, ia, ib: (p, ia, ib))],
        out_specs=pl.BlockSpec((None, TB, TA), lambda p, ia, ib: (p, ib, ia)),
        compiler_params=pltpu.CompilerParams(
            dimension_semantics=("parallel",) * 3),
        cost_estimate=_mem_cost(x3),
    )(x3)


def _transpose_with_last(x, d1, *, budget=_TILE_BUDGET_BYTES):
    """Swap axis d1 (< nd-2) with the last axis: (P, A, Q, B) -> (P, B, Q, A).
    Same lane-dense `.T` kernel as the fast path; the Q axes in between ride
    along as squeezed size-1 blocks, so both load and store are dense (TA, TB)
    slabs instead of trailing-dim-1 strided accesses."""
    shape = x.shape
    nd = x.ndim
    P = math.prod(shape[:d1])
    A = shape[d1]
    Q = math.prod(shape[d1 + 1:nd - 1])
    B = shape[nd - 1]
    x4 = x.reshape(P, A, Q, B)
    TA, TB = _pick_tiles(A, B, 128, 128, x.dtype.itemsize, budget)
    grid = (P, Q, pl.cdiv(A, TA), pl.cdiv(B, TB))
    out4 = pl.pallas_call(
        _last2_transpose_kernel,
        out_shape=jax.ShapeDtypeStruct((P, B, Q, A), x.dtype),
        grid=grid,
        in_specs=[pl.BlockSpec((None, TA, None, TB),
                               lambda p, q, ia, ib: (p, ia, q, ib))],
        out_specs=pl.BlockSpec((None, TB, None, TA),
                               lambda p, q, ia, ib: (p, ib, q, ia)),
        compiler_params=pltpu.CompilerParams(
            dimension_semantics=("parallel",) * 4),
        cost_estimate=_mem_cost(x),
    )(x4)
    out_shape = list(shape)
    out_shape[d1], out_shape[nd - 1] = shape[nd - 1], shape[d1]
    return out4.reshape(out_shape)


def _transpose_general(x, d1, d2, *, budget=_TILE_BUDGET_BYTES):
    """Swap axes d1 < d2 (both before the last axis) via a (P, A, Q, B, R)
    view.  Body is a pure (TA, TR) copy -> lane-dense along the untouched
    trailing axes R; A and R are tiled so every block stays within budget."""
    shape = x.shape
    P = math.prod(shape[:d1])
    A = shape[d1]
    Q = math.prod(shape[d1 + 1:d2])
    Bd = shape[d2]
    R = math.prod(shape[d2 + 1:])
    x5 = x.reshape(P, A, Q, Bd, R)
    itemsize = x.dtype.itemsize
    sublane = 8 * max(1, 4 // itemsize)       # 8 for f32, 16 for bf16, ...
    TA, TR = _pick_tiles(A, R, sublane, 128, itemsize, budget)
    grid = (P, Q, Bd, pl.cdiv(A, TA), pl.cdiv(R, TR))
    out5 = pl.pallas_call(
        _copy_kernel,
        out_shape=jax.ShapeDtypeStruct((P, Bd, Q, A, R), x.dtype),
        grid=grid,
        in_specs=[pl.BlockSpec((None, TA, None, None, TR),
                               lambda p, q, b, ia, ir: (p, ia, q, b, ir))],
        out_specs=pl.BlockSpec((None, None, None, TA, TR),
                               lambda p, q, b, ia, ir: (p, b, q, ia, ir)),
        compiler_params=pltpu.CompilerParams(
            dimension_semantics=("parallel",) * 5),
        cost_estimate=_mem_cost(x),
    )(x5)
    out_shape = list(shape)
    out_shape[d1], out_shape[d2] = shape[d2], shape[d1]
    return out5.reshape(out_shape)


def transpose_pallas(x, dim_1, dim_2, *, tile_budget_bytes=_TILE_BUDGET_BYTES):
    """Pallas equivalent of torch.Tensor.transpose(dim_1, dim_2)."""
    # TODO(synk): for the HiFi-GAN (B, C=80, T) case the output's last dim is
    # <128, so stores are inherently masked; the real fix is fusing the swap
    # into the consumer's BlockSpec index_map (or padding C upstream), which is
    # outside the scope of this standalone module.
    nd = x.ndim
    d1 = dim_1 % nd
    d2 = dim_2 % nd
    if d1 == d2:
        return x
    d1, d2 = min(d1, d2), max(d1, d2)
    if d2 == nd - 1:
        if d1 == nd - 2:
            # HiFi-GAN case: swap of the last two axes (leading dims folded).
            P = math.prod(x.shape[:-2])
            A, B = x.shape[-2], x.shape[-1]
            y = _transpose_last2(x.reshape(P, A, B), budget=tile_budget_bytes)
            return y.reshape(*x.shape[:-2], B, A)
        # Non-adjacent swap with the last axis: still the lane-dense XLU path.
        return _transpose_with_last(x, d1, budget=tile_budget_bytes)
    return _transpose_general(x, d1, d2, budget=tile_budget_bytes)


class Transpose:
    """Drop-in analogue of the PyTorch Transpose(dim_1, dim_2) module."""

    def __init__(self, dim_1: int, dim_2: int):
        self.dim_1 = dim_1
        self.dim_2 = dim_2

    def __call__(self, x):
        return transpose_pallas(x, self.dim_1, self.dim_2)


# ---------------------------------------------------------------------------
# Self-test
# ---------------------------------------------------------------------------
if __name__ == "__main__":
    key = jax.random.PRNGKey(0)
    k1, k2, k3, k4 = jax.random.split(key, 4)

    # 1) HiFi-GAN usage: (B, C, T) NCL activations, Transpose(1, 2).
    x1 = jax.random.normal(k1, (2, 4, 16), jnp.float32)
    y1 = jax.block_until_ready(Transpose(1, 2)(x1))
    assert y1.shape == (2, 16, 4), y1.shape
    assert bool(jnp.array_equal(y1, jnp.swapaxes(x1, 1, 2)))

    # 2) Same path with a tiny tile budget to force a multi-tile, ragged grid
    #    (exercises budget-driven tiling + edge masking).
    x2 = jax.random.normal(k2, (2, 24, 1000), jnp.float32)
    y2 = jax.block_until_ready(
        transpose_pallas(x2, 1, 2, tile_budget_bytes=4096))
    assert y2.shape == (2, 1000, 24), y2.shape
    assert bool(jnp.array_equal(y2, jnp.swapaxes(x2, 1, 2)))

    # 3) Non-adjacent swap involving the last axis (lane-dense rerouted path).
    x3 = jax.random.normal(k3, (2, 4, 3, 8), jnp.float32)
    y3 = jax.block_until_ready(Transpose(1, 3)(x3))
    assert y3.shape == (2, 8, 3, 4), y3.shape
    assert bool(jnp.array_equal(y3, jnp.swapaxes(x3, 1, 3)))

    # 4) General swap of two non-trailing axes (pure-copy index-map path).
    x4 = jax.random.normal(k4, (2, 4, 6, 32), jnp.float32)
    y4 = jax.block_until_ready(Transpose(1, 2)(x4))
    assert y4.shape == (2, 6, 4, 32), y4.shape
    assert bool(jnp.array_equal(y4, jnp.swapaxes(x4, 1, 2)))

    print("KERNEL_OK")
</pallas_src>

<mosaic_0001>
module attributes {stable_mosaic.version = 11 : i64} {
  func.func @_last2_transpose_kernel(%arg0: i32, %arg1: i32, %arg2: i32, %arg3: memref<1x4x16xf32, #tpu.memory_space<vmem>>, %arg4: memref<1x16x4xf32, #tpu.memory_space<vmem>>) attributes {dimension_semantics = [#tpu.dimension_semantics<parallel>, #tpu.dimension_semantics<parallel>, #tpu.dimension_semantics<parallel>], iteration_bounds = array<i64: 2, 1, 1>, scalar_prefetch = 0 : i64, scratch_operands = 0 : i64, tpu.core_type = #tpu.core_type<tc>, window_params = [{transform_indices = @transform_0, window_bounds = array<i64: 1, 4, 16>}, {transform_indices = @transform_1, window_bounds = array<i64: 1, 16, 4>}]} {
    %c0 = arith.constant 0 : index
    %c0_0 = arith.constant 0 : index
    %c0_1 = arith.constant 0 : index
    %0 = vector.load %arg3[%c0, %c0_0, %c0_1] : memref<1x4x16xf32, #tpu.memory_space<vmem>>, vector<1x4x16xf32>
    %1 = vector.shape_cast %0 : vector<1x4x16xf32> to vector<4x16xf32>
    %2 = tpu.transpose %1, [1, 0] : vector<4x16xf32> -> vector<16x4xf32>
    %c0_2 = arith.constant 0 : index
    %c0_3 = arith.constant 0 : index
    %c0_4 = arith.constant 0 : index
    %3 = vector.load %arg4[%c0_2, %c0_3, %c0_4] : memref<1x16x4xf32, #tpu.memory_space<vmem>>, vector<1x16x4xf32>
    %4 = vector.shape_cast %3 : vector<1x16x4xf32> to vector<16x4xf32>
    %5 = vector.shape_cast %2 : vector<16x4xf32> to vector<1x16x4xf32>
    tpu.vector_store %arg4[%c0_2, %c0_3, %c0_4], %5 {strides = array<i32>} : memref<1x16x4xf32, #tpu.memory_space<vmem>>, vector<1x16x4xf32>,
    return
  }
  func.func @transform_0(%arg0: i32, %arg1: i32, %arg2: i32) -> (i32, i32, i32) {
    %c0_i32 = arith.constant 0 : i32
    return %arg0, %arg1, %arg2 : i32, i32, i32
  }
  func.func @transform_1(%arg0: i32, %arg1: i32, %arg2: i32) -> (i32, i32, i32) {
    %c0_i32 = arith.constant 0 : i32
    return %arg0, %arg2, %arg1 : i32, i32, i32
  }
}

</mosaic_0001>

<bundles_post_ra>
// kernel: tpu_custom_call.1
= control target key start
LH: loop header
LB: loop body
LE: loop exit
PB: predicated region body
PF: predicated region fallthrough
CT: control target
= control target key end

     0   :  { %6 = vsyncpa [#allocation3], 0  ;;  %s608_s0 = inlined_call_operand.hbm [shape: f32[2,4,16], index: 0, kind: input, shape index: {}]   ;;  %s609_s1 = inlined_call_operand.vmem [shape: f32[2,16,4], index: 1, kind: output, shape index: {}]  }
   0x1   :  { %8 = vsyncpa [#allocation3 + $0x1], 0  ;;  %s483_s6 = smov 0   ;;  %s485_s7 = smov 0  }
   0x2   :  { %s487_s8 = smov 0   ;;  %s489_s9 = smov 0  }
   0x3   :  { %s491_s10 = smov 0   ;;  %s493_s11 = smov 0  }
   0x4 LB: > { %s321_s12 = sadd.s32 4294967295, %s470_s11   ;;  %s33_s13 = sadd.s32 1, %s466_s10  ;;  %s470_s11 = sphi %s493_s11, %s14_s11   ;;  %s466_s10 = sphi %s491_s10, %s619_s10   ;;  %s462_s9 = sphi %s489_s9, %s618_s9   ;;  %s458_s8 = sphi %s487_s8, %s617_s8   ;;  %s454_s7 = sphi %s485_s7, %s616_s7   ;;  %s450_s6 = sphi %s483_s6, %s615_s6  }
   0x5   : > { %p35_p0 = scmp.ge.s32.totalorder %s33_s13, 2  ;;  %s44_s14 = sadd.s32 1, %s458_s8 }
   0x6   : > { %p51_p1 = scmp.ne.s32.totalorder %s458_s8, %s454_s7  ;;  %p52_p2 = scmp.eq.s32.totalorder %s470_s11, 0 }
   0x7   : > { %s621_s13 = smov (%p35_p0, %s33_s13), 0  ;;  %p57_p4 = scmp.ne.s32.totalorder %s454_s7, %s450_s6 }
   0x8   : > { %p519_p3 = por %p52_p2, %p51_p1  ;;  %s37_s16 = ssub.s32 %s466_s10, %s621_s13 }
   0x9   : > { %p58_p5 = scmp.eq.s32.totalorder %s321_s12, 0  ;;  %p42_p6 = scmp.eq.s32.totalorder %s37_s16, 0 }
   0xa   : > { %p340_p8 = scmp.lt.s32.totalorder %s470_s11, 2  ;;  %s111_s19 = sand.u32 1, %s458_s8  }
   0xb   : > { %p526_p7 = por %p58_p5, %p57_p4  ;;  %s326_s20 = sshll.u32 %s466_s10, 6 }
   0xc   : > { %s532_s18 = scalar_select %p42_p6, %s458_s8, %s44_s14  }
   0xd   : > { %s325_s21 = sshll.u32 %s111_s19, 2  ;;  %s539_s24 = scalar_lea.hbm %s608_s0, %s326_s20 }
   0xe   : > { %s115_s25 = scalar_lea.vmem [#allocation2], %s325_s21  ;;  %p543_p9 = pnand %p340_p8, %p519_p3 }
   0xf   : > { %s124_s26 = sshll.u32 %s115_s25, 4  ;;  %s112_s28 = scalar_lea.sflag [#allocation3], %s111_s19  ;;  %s547_s26 = int_to_ptr.vmem [resolvable:$true] %s124_s26 }
  0x10   : > { %s390_s29 = scalar_lea.hbm %s539_s24, 64  ;;  %p392_p13 = pneg %p543_p9 }
  0x11   : > { %p391_p12 = scmp.ne.s32.totalorder %s539_s24, %s390_s29  ;;  %s395_s3 = scalar_lea.hbm %s608_s0, 128 }
  0x12   : > { %p396_p2 = scmp.lt.u32.totalorder %s539_s24, %s608_s0  ;;  %p397_p3 = scmp.lt.u32.totalorder %s395_s3, %s390_s29 }
  0x13   : > { %p393_p0 = pnand %p392_p13, %p391_p12  ;;  %p399_p5 = scmp.lt.u32.totalorder %s390_s29, %s539_s24 }
  0x14   : > { %p398_p4 = por %p397_p3, %p396_p2 }
  0x15   : > { %p394_p1 = pneg %p393_p0 }
  0x16   : > { %p400_p6 = por %p399_p5, %p398_p4 }
  0x18   : > { %p401_p8 = pnand %p400_p6, %p394_p1 }
  0x1a   : > { %404 = shalt.err (!%p401_p8)
}
  0x1b   : > { %s405_s6 = scalar_lea.vmem %s547_s26, 64  ;;  %s472_s12 = smov [#allocation2]  }
  0x1c   : > { %p406_p12 = scmp.ne.s32.totalorder %s547_s26, %s405_s6  ;;  %s410_s14 = sshll.u32 %s472_s12, 4  ;;  %s411_s14 = int_to_ptr.vmem [resolvable:$false] %s410_s14 }
  0x1d   : > { %s412_s15 = scalar_lea.vmem %s411_s14, 128  ;;  %p413_p11 = scmp.lt.s32.totalorder %s547_s26, %s411_s14 }
  0x1e   : > { %p408_p0 = pnand %p406_p12, %p392_p13  ;;  %p414_p2 = scmp.lt.s32.totalorder %s412_s15, %s405_s6 }
  0x20   : > { %p409_p10 = pneg %p408_p0  ;;  %p415_p3 = por %p414_p2, %p413_p11 }
  0x22   : > { %p416_p4 = pnand %p415_p3, %p409_p10 }
  0x24   : > { %419 = shalt.err (!%p416_p4)
}
  0x25   : > { %339 = dma.hbm_to_vmem [thread:$0]  (!%p543_p9), %s539_s24, 64, %s547_s26, %s112_s28  }
  0x26   : > { %p613_p1 = scmp.lt.s32.totalorder %s470_s11, 3  ;;  %p614_p5 = scmp.ge.s32.totalorder %s470_s11, 1 }
  0x28   : > { %p130_p13 = pnand %p614_p5, %p613_p1 }
  0x29   : > { %s135_s16 = sand.u32 (!%p130_p13), 1, %s454_s7  }
  0x2a   : > { %133 = sbr.rel (%p130_p13) target bundleno = 185 (0xb9), region = 24  ;;  %s328_s19 = sshll.u32 (!%p130_p13), %s135_s16, 2 }
  0x2b   : > { %s136_s20 = scalar_lea.sflag (!%p130_p13), [#allocation3], %s135_s16  ;;  %s139_s21 = scalar_lea.vmem (!%p130_p13), [#allocation2], %s328_s19 }
  0x31   : > { %445 = dma.done.wait (%p526_p7), %s136_s20, 64  }
  0x32   : > { %447 = vsyncadd (%p526_p7), %s136_s20, 4294967232  ;;  %v178_v0 = vld [vmem:[%s139_s21] sm:$0xf]  ;;  %p166_p9 = scmp.lt.s32.totalorder %s462_s9, 1  ;;  %vm211_vm0 = vcmask 31744  }
  0x33   : > { %179 = vxpose.xlu0.b32.start.end [1/1] (short) (narrow) %v178_v0, 16 }
  0x34   : > { %s623_s9 = smov (!%p166_p9, %s462_s9), 1 }
  0x35   : > { %s333_s22 = sshll.u32 %s623_s9, 4 }
  0x36   : > { %s176_s25 = scalar_lea.vmem %s609_s1, %s333_s22 }
  0xb3   : > { %v195_v1 = vpop.trf.xlu0 }
  0xb4   : > { %212 = vst.msk [vmem:[%s176_s25] sm:$0xff] %vm211_vm0, %v195_v1 }
  0xb7   : > { %v196_v2 = vpop.trf.xlu0 }
  0xb8   : > { %213 = vst.msk [vmem:[%s176_s25 + $0x8] sm:$0xff] %vm211_vm0, %v196_v2 }
  0xb9 PF: > { %s14_s11 = sadd.s32 1, %s470_s11   ;;  %s615_s6 = smov %s454_s7 }
  0xba   : > { %p11_p7 = scmp.ge.s32.totalorder %s14_s11, 4   ;;  %s616_s7 = smov %s458_s8 }
  0xbb   : > { %s617_s8 = smov %s532_s18  ;;  %s618_s9 = smov %s466_s10 }
  0xbc   : > { %s619_s10 = smov %s621_s13  ;;  %13 = sbr.rel (!%p11_p7) target bundleno = 4 (0x4), region = 64 }
  0xc3   :  { %250 = vsyncpa [#allocation3], 1 }
  0xc4   :  { %252 = vsyncpa [#allocation3 + $0x1], 1 }

</bundles_post_ra>
